<compile_context>
chip_gen: v5e
topology: v5e:2x2
jax: 0.10.0
libtpu: 0.0.40
codegen_flags: <defaults>
</compile_context>

<pallas_src>
import jax
import jax.numpy as jnp
from jax.experimental import pallas as pl
from jax.experimental.pallas import tpu as pltpu


def _gcm_kernel(w_ref, o_ref):
    # w_ref: (C, C)      global confusion-matrix weights (VMEM)
    # o_ref: (C, C, HW)  lane-dense output slab for one batch element
    w = w_ref[...].astype(jnp.float32)
    # Numerically stable softplus: max(x, 0) + log1p(exp(-|x|))
    # (matches torch.nn.Softplus(beta=1) to f32 precision, incl. large |x|).
    sp = jnp.maximum(w, 0.0) + jnp.log1p(jnp.exp(-jnp.abs(w)))
    # Lane-broadcast (C, C, 1) -> (C, C, HW) and store the whole tile at once.
    o_ref[...] = jnp.broadcast_to(sp[:, :, None], o_ref.shape).astype(o_ref.dtype)


def gcm_layers_forward(x, global_weights, input_height, input_width):
    """Forward pass of gcm_layers.

    x:              (B, ...) -- only the batch dimension is used (as in PyTorch).
    global_weights: (class_no, class_no) learned confusion matrix.
    returns:        (B, class_no, class_no, input_height, input_width)
    """
    B = x.shape[0]
    C = global_weights.shape[0]
    H, W = input_height, input_width
    HW = H * W

    out = pl.pallas_call(
        _gcm_kernel,
        out_shape=jax.ShapeDtypeStruct((B, C, C, HW), global_weights.dtype),
        grid_spec=pltpu.PrefetchScalarGridSpec(
            num_scalar_prefetch=0,
            grid=(B,),
            in_specs=[
                # (C, C) equals the full array dims -> legal small block; the
                # tiny weight tile stays resident in VMEM across all grid steps.
                pl.BlockSpec((C, C), lambda b: (0, 0)),
            ],
            # Per-step output block: one batch element's (C, C, HW) slab.
            # Last dim HW (= 256 here) is a full, 128-multiple lane extent ->
            # unmasked lane-dense stores; batch dim squeezed out of the kernel.
            out_specs=pl.BlockSpec((pl.Squeezed(), C, C, HW),
                                   lambda b: (b, 0, 0, 0)),
        ),
        compiler_params=pltpu.CompilerParams(dimension_semantics=("parallel",)),
    )(global_weights)

    # Contiguous reshape (no data movement) back to the PyTorch output layout.
    return out.reshape(B, C, C, H, W)


if __name__ == "__main__":
    class_no, B, H, W = 4, 2, 16, 16

    key = jax.random.PRNGKey(0)
    kx, kw = jax.random.split(key)

    # x is only used for its batch size (as in the PyTorch module).
    x = jax.random.normal(kx, (B, class_no, H, W), jnp.float32)

    # Parameter initialized like the module (identity) plus a small deterministic
    # perturbation so softplus is exercised at varied values.
    global_weights = (jnp.eye(class_no, dtype=jnp.float32)
                      + 0.1 * jax.random.normal(kw, (class_no, class_no),
                                                jnp.float32))

    fwd = jax.jit(lambda xx, ww: gcm_layers_forward(xx, ww, H, W))
    out = jax.block_until_ready(fwd(x, global_weights))

    assert out.shape == (B, class_no, class_no, H, W), out.shape

    # Pure-JAX reference (same math as the PyTorch forward).
    ref = jnp.broadcast_to(
        jax.nn.softplus(global_weights)[None, :, :, None, None],
        (B, class_no, class_no, H, W))
    max_err = float(jnp.max(jnp.abs(out - ref)))
    assert jnp.allclose(out, ref, atol=1e-6, rtol=1e-6), max_err

    print("KERNEL_OK")
</pallas_src>

<mosaic_0001>
module attributes {stable_mosaic.version = 11 : i64} {
  func.func @_gcm_kernel(%arg0: i32, %arg1: memref<4x4xf32, #tpu.memory_space<vmem>>, %arg2: memref<1x4x4x256xf32, #tpu.memory_space<vmem>>) attributes {dimension_semantics = [#tpu.dimension_semantics<parallel>], iteration_bounds = array<i64: 2>, scalar_prefetch = 0 : i64, scratch_operands = 0 : i64, tpu.core_type = #tpu.core_type<tc>, window_params = [{pipeline_mode = #tpu.pipeline_mode<synchronous>, transform_indices = @transform_0, window_bounds = array<i64: 4, 4>}, {transform_indices = @transform_1, window_bounds = array<i64: 1, 4, 4, 256>}]} {
    %c0 = arith.constant 0 : index
    %c0_0 = arith.constant 0 : index
    %0 = vector.load %arg1[%c0, %c0_0] : memref<4x4xf32, #tpu.memory_space<vmem>>, vector<4x4xf32>
    %cst = arith.constant 0.000000e+00 : f32
    %1 = vector.broadcast %cst : f32 to vector<4x4xf32>
    %2 = arith.maximumf %0, %1 : vector<4x4xf32>
    %3 = math.absf %0 : vector<4x4xf32>
    %cst_1 = arith.constant 0.000000e+00 : f32
    %4 = vector.broadcast %cst_1 : f32 to vector<4x4xf32>
    %5 = arith.subf %4, %3 : vector<4x4xf32>
    %6 = math.exp %5 : vector<4x4xf32>
    %7 = math.log1p %6 : vector<4x4xf32>
    %8 = arith.addf %2, %7 : vector<4x4xf32>
    %9 = vector.shape_cast %8 : vector<4x4xf32> to vector<4x4x1xf32>
    %10 = vector.shape_cast %9 : vector<4x4x1xf32> to vector<4x4x1xf32>
    %11 = vector.broadcast %10 : vector<4x4x1xf32> to vector<4x4x256xf32>
    %c0_2 = arith.constant 0 : index
    %c0_3 = arith.constant 0 : index
    %c0_4 = arith.constant 0 : index
    %c0_5 = arith.constant 0 : index
    %12 = vector.load %arg2[%c0_2, %c0_3, %c0_4, %c0_5] : memref<1x4x4x256xf32, #tpu.memory_space<vmem>>, vector<1x4x4x256xf32>
    %13 = vector.shape_cast %12 : vector<1x4x4x256xf32> to vector<4x4x256xf32>
    %14 = vector.shape_cast %11 : vector<4x4x256xf32> to vector<1x4x4x256xf32>
    tpu.vector_store %arg2[%c0_2, %c0_3, %c0_4, %c0_5], %14 {strides = array<i32>} : memref<1x4x4x256xf32, #tpu.memory_space<vmem>>, vector<1x4x4x256xf32>,
    return
  }
  func.func @transform_0(%arg0: i32) -> (i32, i32) {
    %c0_i32 = arith.constant 0 : i32
    %c0_i32_0 = arith.constant 0 : i32
    %c0_i32_1 = arith.constant 0 : i32
    return %c0_i32, %c0_i32_0 : i32, i32
  }
  func.func @transform_1(%arg0: i32) -> (i32, i32, i32, i32) {
    %c0_i32 = arith.constant 0 : i32
    %c0_i32_0 = arith.constant 0 : i32
    %c0_i32_1 = arith.constant 0 : i32
    %c0_i32_2 = arith.constant 0 : i32
    return %arg0, %c0_i32, %c0_i32_0, %c0_i32_1 : i32, i32, i32, i32
  }
}

</mosaic_0001>

<bundles_post_ra>
// kernel: _lambda_.1
= control target key start
LH: loop header
LB: loop body
LE: loop exit
PB: predicated region body
PF: predicated region fallthrough
CT: control target
= control target key end

     0   :  { %6 = vsyncpa [#allocation3], 0  ;;  %s330_s6 = smov 0   ;;  %s352_s0 = inlined_call_operand.hbm [shape: f32[4,4], index: 0, kind: input, shape index: {}]   ;;  %s353_s1 = inlined_call_operand.vmem [shape: f32[2,4,4,256], index: 1, kind: output, shape index: {}]  }
   0x1 LB: > { %s336_s7 = sadd.s32 4294967295, %s316_s6   ;;  %p241_p0 = scmp.ge.s32.totalorder %s316_s6, 1  ;;  %s316_s6 = sphi %s330_s6, %s12_s6  }
   0x2   : > { %p64_p1 = scmp.lt.s32.totalorder %s316_s6, 3  ;;  %s76_s10 = sshll.u32 %s352_s0, 4  ;;  %s77_s10 = int_to_ptr.hbm [resolvable:$true] %s76_s10 }
   0x3   : > { %p258_p3 = scmp.eq.s32.totalorder %s336_s7, 0  ;;  %s318_s11 = smov [#allocation2]  }
   0x4   : > { %p65_p2 = pnand %p241_p0, %p64_p1  ;;  %s78_s12 = sshll.u32 %s318_s11, 4  ;;  %s79_s12 = int_to_ptr.vmem [resolvable:$true] %s78_s12 }
   0x6   : > { %p254_p4 = pneg %p65_p2  ;;  %91 = sbr.rel (%p65_p2) target bundleno = 169 (0xa9), region = 24 }
   0x8   : > { %p255_p5 = pnand %p258_p3, %p254_p4 }
   0xa   : > { %257 = dma.hbm_to_vmem [thread:$0]  (!%p255_p5), %s77_s10, 64, %s79_s12, [#allocation3]  }
   0xb   : > { %311 = dma.done.wait (%p258_p3), [#allocation3], 64  }
   0xc   : > { %313 = vsyncadd (%p258_p3), [#allocation3], 4294967232  ;;  %v129_v0 = vlaneseq  ;;  %v112_v2 = vld [vmem:[#allocation2] sm:$0xf]  ;;  %p107_p6 = scmp.lt.s32.totalorder %s336_s7, 1 }
   0xd   : > { %v114_v3 = vand.u32 2147483647, %v112_v2  ;;  %v113_v13 = vmax.f32 %v112_v2, 0.0  ;;  %v319_v21 = vmov 839922192  }
   0xe   : > { %v130_v1 = vshrl.u32 %v129_v0, 7  ;;  %s355_s7 = smov (!%p107_p6, %s336_s7), 1  ;;  %v161_v22 = vunpack.c.l.s4 %v319_v21 }
   0xf   : > { %v115_v4 = vsub.f32 0.0, %v114_v3  ;;  %s249_s13 = sshll.u32 %s355_s7, 5 }
  0x10   : > { %271 = vset.pattern.permute.xlu1 %v130_v1  ;;  %270 = vset.pattern.permute.xlu0 %v130_v1  ;;  %v162_v23 = vunpack.c.0.s8 %v161_v22  ;;  %s111_s16 = scalar_lea.vmem %s353_s1, %s249_s13 }
  0x11   : > { %v116_v5 = vmul.f32 1.442695, %v115_v4 }
  0x13   : > { %272 = vpow2.f32 %v116_v5 }
  0x19   : > { %v273_v6 = vpop.eup %272 }
  0x1a   : > { %v118_v7 = vadd.f32 1.0, %v273_v6  ;;  %v121_v8 = vmul.f32 -0.5, %v273_v6  ;;  %v124_v10 = vand.u32 2147483647, %v273_v6 }
  0x1c   : > { %274 = vlog2.f32 %v118_v7  ;;  %v122_v9 = vadd.f32 1.0, %v121_v8  ;;  %vm125_vm0 = vcmp.lt.f32.partialorder %v124_v10, 0.0004427343 }
  0x1e   : > { %v123_v11 = vmul.f32 %v273_v6, %v122_v9 }
  0x22   : > { %v275_v12 = vpop.eup %274 }
  0x23   : > { %v120_v14 = vmul.f32 0.6931472, %v275_v12 }
  0x25   : > { %v126_v15 = vsel %vm125_vm0, %v123_v11, %v120_v14 }
  0x26   : > { %v127_v16 = vadd.f32 %v126_v15, %v113_v13 }
  0x28   : > { %v142_v17 = vperm.slane %v127_v16, 2  ;;  %v128_v18 = vperm.slane %v127_v16, 0  ;;  %v149_v19 = vperm.slane %v127_v16, 3  ;;  %v135_v20 = vperm.slane %v127_v16, 1 }
  0x2a   : > { %147 = vperm.xlu1 %271, %v142_v17   ;;  %133 = vperm.xlu0 %270, %v128_v18  }
  0x32   : > { %154 = vperm.xlu1 %271, %v149_v19   ;;  %140 = vperm.xlu0 %270, %v135_v20  }
  0x9c   : > { %v148_v24 = vpop.permute.xlu1 %147  ;;  %v134_v25 = vpop.permute.xlu0 %133 }
  0x9d   : > { %v171_v26 = vperm.slane %v148_v24, %v162_v23  ;;  %v163_v27 = vperm.slane %v134_v25, %v162_v23 }
  0x9f   : > { %182 = vst [vmem:[%s111_s16 + $0x10] sm:$0xff] %v171_v26 }
  0xa0   : > { %180 = vst [vmem:[%s111_s16] sm:$0xff] %v163_v27 }
  0xa4   : > { %v155_v28 = vpop.permute.xlu1 %154  ;;  %v141_v29 = vpop.permute.xlu0 %140 }
  0xa5   : > { %v175_v30 = vperm.slane %v155_v28, %v162_v23  ;;  %v167_v31 = vperm.slane %v141_v29, %v162_v23 }
  0xa7   : > { %183 = vst [vmem:[%s111_s16 + $0x18] sm:$0xff] %v175_v30 }
  0xa8   : > { %181 = vst [vmem:[%s111_s16 + $0x8] sm:$0xff] %v167_v31 }
  0xa9 PF: > { %s12_s6 = sadd.s32 1, %s316_s6  }
  0xaa   : > { %p9_p7 = scmp.ge.s32.totalorder %s12_s6, 4  }
  0xac   :  { %11 = sbr.rel (!%p9_p7) target bundleno = 1 (0x1), region = 56 }
  0xb1   :  { %205 = vsyncpa [#allocation3], 1 }
  0xb2   :  { %207 = vsyncpa [#allocation3 + $0x1], 1 }

</bundles_post_ra>
